<compile_context>
chip_gen: v7x
topology: tpu7x:2x2x1
jax: 0.10.0
libtpu: 0.0.40
codegen_flags: <defaults>
</compile_context>

<pallas_src>
import jax
import jax.numpy as jnp
from jax.experimental import pallas as pl
from jax.experimental.pallas import tpu as pltpu


_MAX_BATCH_TILE = 2048  # multiple of 128 (lane-dense output block) and of 8


def t_mlp_kernel(gen_ref, cod_ref, w1g_ref, w1c_ref, b1_ref,
                 w2_ref, b2_ref, w3_ref, b3_ref, o_ref):
    """One batch tile of the 3-layer MLP, fully fused in VMEM."""
    g = gen_ref[...]                                       # [TB, gen_dim]
    c = cod_ref[...]                                       # [TB, code_dim]

    # Layer 1: concat fused as a split matmul (gen block first, then codes —
    # matches torch.cat((gen, codes), dim=1) ordering of W1 rows).
    h1 = (jnp.dot(g, w1g_ref[...], preferred_element_type=jnp.float32)
          + jnp.dot(c, w1c_ref[...], preferred_element_type=jnp.float32)
          + b1_ref[...])
    h1 = jnp.maximum(h1, 0.0)                              # ReLU (VPU)

    # Layer 2.
    h2 = jnp.dot(h1, w2_ref[...], preferred_element_type=jnp.float32) + b2_ref[...]
    h2 = jnp.maximum(h2, 0.0)                              # ReLU (VPU)

    # Layer 3 (hid -> 1): elementwise multiply + lane reduce instead of an MXU
    # matmul whose result would occupy a single output column.
    y = jnp.sum(h2 * w3_ref[...], axis=-1) + b3_ref[0]     # [TB], f32
    o_ref[...] = y.reshape(1, -1).astype(o_ref.dtype)      # lane-dense [1, TB]


def _batch_tile(batch):
    # Lane-dense output block (1, TB) needs TB % 128 == 0 unless TB == full B.
    if batch <= _MAX_BATCH_TILE:
        return batch
    return _MAX_BATCH_TILE  # partial last tile handled by Pallas padding


def t_forward(gen, codes, params):
    """Pallas wrapper reproducing T.forward(gen, codes).

    gen:   [B, gen_out_dim] float32
    codes: [B, code_dim]    float32
    returns [B, 1] float32 (same as the PyTorch module).
    """
    w1, b1, w2, b2, w3, b3 = params
    B, gen_dim = gen.shape
    _, code_dim = codes.shape
    hid = w1.shape[1]

    # Split the first-layer weight so the concat never materializes.
    w1_gen = w1[:gen_dim, :]                               # [gen_dim, hid]
    w1_cod = w1[gen_dim:, :]                               # [code_dim, hid]
    b1_row = b1.reshape(1, hid)
    b2_row = b2.reshape(1, hid)
    w3_row = w3.reshape(1, hid)                            # [1, hid]
    b3_s = b3.reshape(1).astype(jnp.float32)               # SMEM scalar

    tb = _batch_tile(B)
    grid = (pl.cdiv(B, tb),)
    const = lambda i: (0, 0)                               # VMEM-resident operands

    out_row = pl.pallas_call(
        t_mlp_kernel,
        out_shape=jax.ShapeDtypeStruct((1, B), jnp.float32),
        grid=grid,
        in_specs=[
            pl.BlockSpec((tb, gen_dim), lambda i: (i, 0)),   # gen   (streamed)
            pl.BlockSpec((tb, code_dim), lambda i: (i, 0)),  # codes (streamed)
            pl.BlockSpec((gen_dim, hid), const),             # W1_gen (resident)
            pl.BlockSpec((code_dim, hid), const),            # W1_codes
            pl.BlockSpec((1, hid), const),                   # b1
            pl.BlockSpec((hid, hid), const),                 # W2
            pl.BlockSpec((1, hid), const),                   # b2
            pl.BlockSpec((1, hid), const),                   # w3 row
            pl.BlockSpec(memory_space=pltpu.MemorySpace.SMEM),  # b3 scalar
        ],
        out_specs=pl.BlockSpec((1, tb), lambda i: (0, i)),   # lane-dense output
        compiler_params=pltpu.CompilerParams(
            dimension_semantics=("parallel",),
            vmem_limit_bytes=64 * 1024 * 1024,
        ),
    )(gen, codes, w1_gen, w1_cod, b1_row, w2, b2_row, w3_row, b3_s)

    return out_row.reshape(B, 1)                             # match PyTorch [B, 1]


def init_params(key, gen_out_dim, code_dim, hid_size):
    """Deterministic init mimicking nn.Linear's U(-1/sqrt(fan_in), +1/sqrt(fan_in)).

    Weights are returned as [in, out] (transposed vs. PyTorch's [out, in])."""
    d_in = code_dim + gen_out_dim
    keys = jax.random.split(key, 6)

    def lin(kw, kb, fan_in, fan_out):
        bound = 1.0 / jnp.sqrt(jnp.float32(fan_in))
        w = jax.random.uniform(kw, (fan_in, fan_out), jnp.float32, -bound, bound)
        b = jax.random.uniform(kb, (1, fan_out), jnp.float32, -bound, bound)
        return w, b

    w1, b1 = lin(keys[0], keys[1], d_in, hid_size)
    w2, b2 = lin(keys[2], keys[3], hid_size, hid_size)
    w3, b3 = lin(keys[4], keys[5], hid_size, 1)
    return (w1, b1, w2, b2, w3, b3)


def t_forward_ref(gen, codes, params):
    """Pure-JAX reference for correctness checking."""
    w1, b1, w2, b2, w3, b3 = params
    x = jnp.concatenate([gen, codes], axis=1)
    h1 = jnp.maximum(x @ w1 + b1, 0.0)
    h2 = jnp.maximum(h1 @ w2 + b2, 0.0)
    return h2 @ w3 + b3


if __name__ == "__main__":
    # Small shapes consistent with the module's forward.
    gen_out_dim, code_dim, hid_size = 16, 4, 32
    batch = 8

    key = jax.random.PRNGKey(0)
    k_params, k_gen, k_codes = jax.random.split(key, 3)

    params = init_params(k_params, gen_out_dim, code_dim, hid_size)
    gen = jax.random.normal(k_gen, (batch, gen_out_dim), jnp.float32)
    codes = jax.random.uniform(k_codes, (batch, code_dim), jnp.float32, -1.0, 1.0)

    fwd = jax.jit(t_forward)
    out = jax.block_until_ready(fwd(gen, codes, params))

    ref = t_forward_ref(gen, codes, params)
    assert out.shape == (batch, 1)
    assert jnp.allclose(out, ref, atol=1e-5, rtol=1e-5)

    print("KERNEL_OK")
</pallas_src>

<mosaic_0001>
module attributes {stable_mosaic.version = 11 : i64} {
  func.func @t_mlp_kernel(%arg0: i32, %arg1: memref<8x16xf32, #tpu.memory_space<vmem>>, %arg2: memref<8x4xf32, #tpu.memory_space<vmem>>, %arg3: memref<16x32xf32, #tpu.memory_space<vmem>>, %arg4: memref<4x32xf32, #tpu.memory_space<vmem>>, %arg5: memref<1x32xf32, #tpu.memory_space<vmem>>, %arg6: memref<32x32xf32, #tpu.memory_space<vmem>>, %arg7: memref<1x32xf32, #tpu.memory_space<vmem>>, %arg8: memref<1x32xf32, #tpu.memory_space<vmem>>, %arg9: memref<1xf32, #tpu.memory_space<smem>>, %arg10: memref<1x8xf32, #tpu.memory_space<vmem>>) attributes {dimension_semantics = [#tpu.dimension_semantics<parallel>], iteration_bounds = array<i64: 1>, scalar_prefetch = 0 : i64, scratch_operands = 0 : i64, tpu.core_type = #tpu.core_type<tc>, window_params = [{transform_indices = @transform_0, window_bounds = array<i64: 8, 16>}, {transform_indices = @transform_1, window_bounds = array<i64: 8, 4>}, {pipeline_mode = #tpu.pipeline_mode<synchronous>, transform_indices = @transform_2, window_bounds = array<i64: 16, 32>}, {pipeline_mode = #tpu.pipeline_mode<synchronous>, transform_indices = @transform_3, window_bounds = array<i64: 4, 32>}, {pipeline_mode = #tpu.pipeline_mode<synchronous>, transform_indices = @transform_4, window_bounds = array<i64: 1, 32>}, {pipeline_mode = #tpu.pipeline_mode<synchronous>, transform_indices = @transform_5, window_bounds = array<i64: 32, 32>}, {pipeline_mode = #tpu.pipeline_mode<synchronous>, transform_indices = @transform_6, window_bounds = array<i64: 1, 32>}, {pipeline_mode = #tpu.pipeline_mode<synchronous>, transform_indices = @transform_7, window_bounds = array<i64: 1, 32>}, {transform_indices = @transform_8, window_bounds = array<i64: 1>}, {transform_indices = @transform_9, window_bounds = array<i64: 1, 8>}]} {
    %c0 = arith.constant 0 : index
    %c0_0 = arith.constant 0 : index
    %0 = vector.load %arg1[%c0, %c0_0] : memref<8x16xf32, #tpu.memory_space<vmem>>, vector<8x16xf32>
    %c0_1 = arith.constant 0 : index
    %c0_2 = arith.constant 0 : index
    %1 = vector.load %arg2[%c0_1, %c0_2] : memref<8x4xf32, #tpu.memory_space<vmem>>, vector<8x4xf32>
    %c0_3 = arith.constant 0 : index
    %c0_4 = arith.constant 0 : index
    %2 = vector.load %arg3[%c0_3, %c0_4] : memref<16x32xf32, #tpu.memory_space<vmem>>, vector<16x32xf32>
    %cst = arith.constant dense<0.000000e+00> : vector<8x32xf32>
    %3 = tpu.matmul %0, %2, %cst {dimension_numbers = #tpu.dot_dimension_numbers<[1], [0], [0], [1], [0, 0, 1, 1], [], []>} : vector<8x16xf32>, vector<16x32xf32>, vector<8x32xf32> -> vector<8x32xf32>
    %c0_5 = arith.constant 0 : index
    %c0_6 = arith.constant 0 : index
    %4 = vector.load %arg4[%c0_5, %c0_6] : memref<4x32xf32, #tpu.memory_space<vmem>>, vector<4x32xf32>
    %cst_7 = arith.constant dense<0.000000e+00> : vector<8x32xf32>
    %5 = tpu.matmul %1, %4, %cst_7 {dimension_numbers = #tpu.dot_dimension_numbers<[1], [0], [0], [1], [0, 0, 1, 1], [], []>} : vector<8x4xf32>, vector<4x32xf32>, vector<8x32xf32> -> vector<8x32xf32>
    %6 = arith.addf %3, %5 : vector<8x32xf32>
    %c0_8 = arith.constant 0 : index
    %c0_9 = arith.constant 0 : index
    %7 = vector.load %arg5[%c0_8, %c0_9] : memref<1x32xf32, #tpu.memory_space<vmem>>, vector<1x32xf32>
    %8 = vector.broadcast %7 : vector<1x32xf32> to vector<8x32xf32>
    %9 = arith.addf %6, %8 : vector<8x32xf32>
    %cst_10 = arith.constant 0.000000e+00 : f32
    %10 = vector.broadcast %cst_10 : f32 to vector<8x32xf32>
    %11 = arith.maximumf %9, %10 : vector<8x32xf32>
    %c0_11 = arith.constant 0 : index
    %c0_12 = arith.constant 0 : index
    %12 = vector.load %arg6[%c0_11, %c0_12] : memref<32x32xf32, #tpu.memory_space<vmem>>, vector<32x32xf32>
    %cst_13 = arith.constant dense<0.000000e+00> : vector<8x32xf32>
    %13 = tpu.matmul %11, %12, %cst_13 {dimension_numbers = #tpu.dot_dimension_numbers<[1], [0], [0], [1], [0, 0, 1, 1], [], []>} : vector<8x32xf32>, vector<32x32xf32>, vector<8x32xf32> -> vector<8x32xf32>
    %c0_14 = arith.constant 0 : index
    %c0_15 = arith.constant 0 : index
    %14 = vector.load %arg7[%c0_14, %c0_15] : memref<1x32xf32, #tpu.memory_space<vmem>>, vector<1x32xf32>
    %15 = vector.broadcast %14 : vector<1x32xf32> to vector<8x32xf32>
    %16 = arith.addf %13, %15 : vector<8x32xf32>
    %cst_16 = arith.constant 0.000000e+00 : f32
    %17 = vector.broadcast %cst_16 : f32 to vector<8x32xf32>
    %18 = arith.maximumf %16, %17 : vector<8x32xf32>
    %c0_17 = arith.constant 0 : index
    %c0_18 = arith.constant 0 : index
    %19 = vector.load %arg8[%c0_17, %c0_18] : memref<1x32xf32, #tpu.memory_space<vmem>>, vector<1x32xf32>
    %20 = vector.broadcast %19 : vector<1x32xf32> to vector<8x32xf32>
    %21 = arith.mulf %18, %20 : vector<8x32xf32>
    %cst_19 = arith.constant dense<0.000000e+00> : vector<8xf32>
    %22 = vector.multi_reduction <add>, %21, %cst_19 [1] : vector<8x32xf32> to vector<8xf32>
    %c0_20 = arith.constant 0 : index
    %23 = memref.load %arg9[%c0_20] : memref<1xf32, #tpu.memory_space<smem>>
    %24 = vector.broadcast %23 : f32 to vector<8xf32>
    %25 = arith.addf %22, %24 : vector<8xf32>
    %26 = vector.shape_cast %25 : vector<8xf32> to vector<1x8xf32>
    %c0_21 = arith.constant 0 : index
    %c0_22 = arith.constant 0 : index
    %27 = vector.load %arg10[%c0_21, %c0_22] : memref<1x8xf32, #tpu.memory_space<vmem>>, vector<1x8xf32>
    tpu.vector_store %arg10[%c0_21, %c0_22], %26 {strides = array<i32>} : memref<1x8xf32, #tpu.memory_space<vmem>>, vector<1x8xf32>,
    return
  }
  func.func @transform_0(%arg0: i32) -> (i32, i32) {
    %c0_i32 = arith.constant 0 : i32
    %c0_i32_0 = arith.constant 0 : i32
    return %arg0, %c0_i32 : i32, i32
  }
  func.func @transform_1(%arg0: i32) -> (i32, i32) {
    %c0_i32 = arith.constant 0 : i32
    %c0_i32_0 = arith.constant 0 : i32
    return %arg0, %c0_i32 : i32, i32
  }
  func.func @transform_2(%arg0: i32) -> (i32, i32) {
    %c0_i32 = arith.constant 0 : i32
    %c0_i32_0 = arith.constant 0 : i32
    %c0_i32_1 = arith.constant 0 : i32
    return %c0_i32, %c0_i32_0 : i32, i32
  }
  func.func @transform_3(%arg0: i32) -> (i32, i32) {
    %c0_i32 = arith.constant 0 : i32
    %c0_i32_0 = arith.constant 0 : i32
    %c0_i32_1 = arith.constant 0 : i32
    return %c0_i32, %c0_i32_0 : i32, i32
  }
  func.func @transform_4(%arg0: i32) -> (i32, i32) {
    %c0_i32 = arith.constant 0 : i32
    %c0_i32_0 = arith.constant 0 : i32
    %c0_i32_1 = arith.constant 0 : i32
    return %c0_i32, %c0_i32_0 : i32, i32
  }
  func.func @transform_5(%arg0: i32) -> (i32, i32) {
    %c0_i32 = arith.constant 0 : i32
    %c0_i32_0 = arith.constant 0 : i32
    %c0_i32_1 = arith.constant 0 : i32
    return %c0_i32, %c0_i32_0 : i32, i32
  }
  func.func @transform_6(%arg0: i32) -> (i32, i32) {
    %c0_i32 = arith.constant 0 : i32
    %c0_i32_0 = arith.constant 0 : i32
    %c0_i32_1 = arith.constant 0 : i32
    return %c0_i32, %c0_i32_0 : i32, i32
  }
  func.func @transform_7(%arg0: i32) -> (i32, i32) {
    %c0_i32 = arith.constant 0 : i32
    %c0_i32_0 = arith.constant 0 : i32
    %c0_i32_1 = arith.constant 0 : i32
    return %c0_i32, %c0_i32_0 : i32, i32
  }
  func.func @transform_8(%arg0: i32) -> i32 {
    %c0_i32 = arith.constant 0 : i32
    %c0_i32_0 = arith.constant 0 : i32
    return %c0_i32 : i32
  }
  func.func @transform_9(%arg0: i32) -> (i32, i32) {
    %c0_i32 = arith.constant 0 : i32
    %c0_i32_0 = arith.constant 0 : i32
    return %c0_i32, %arg0 : i32, i32
  }
}

</mosaic_0001>

<bundles_post_ra>
// kernel: t_forward.1
= control target key start
LH: loop header
LB: loop body
LE: loop exit
PB: predicated region body
PF: predicated region fallthrough
CT: control target
= control target key end

     0   :  { %15 = vsyncpa [#allocation4], 0  ;;  %s880_s0 = inlined_call_operand.hbm [shape: f32[8,16], index: 0, kind: input, shape index: {}]   ;;  %s881_s1 = inlined_call_operand.hbm [shape: f32[8,4], index: 1, kind: input, shape index: {}]   ;;  %s882_s2 = inlined_call_operand.hbm [shape: f32[16,32], index: 2, kind: input, shape index: {}]   ;;  %s883_s3 = inlined_call_operand.hbm [shape: f32[4,32], index: 3, kind: input, shape index: {}]   ;;  %s884_s4 = inlined_call_operand.hbm [shape: f32[1,32], index: 4, kind: input, shape index: {}]   ;;  %s885_s5 = inlined_call_operand.hbm [shape: f32[32,32], index: 5, kind: input, shape index: {}]   ;;  %s886_s6 = inlined_call_operand.hbm [shape: f32[1,32], index: 6, kind: input, shape index: {}]   ;;  %s887_s7 = inlined_call_operand.hbm [shape: f32[1,32], index: 7, kind: input, shape index: {}]   ;;  %s888_s8 = inlined_call_operand.<no memory space> [shape: f32[1], index: 8, kind: input, shape index: {}]   ;;  %s889_s9 = inlined_call_operand.hbm [shape: f32[1,8], index: 9, kind: output, shape index: {}]  }
   0x1   :  { %16 = vsyncpa [#allocation7], 0 }
   0x2   :  { %17 = vsyncpa [#allocation10], 0 }
   0x3   :  { %18 = vsyncpa [#allocation13], 0 }
   0x4   :  { %19 = vsyncpa [#allocation16], 0 }
   0x5   :  { %20 = vsyncpa [#allocation5], 0  ;;  %s699_s30 = smov [#allocation6]   ;;  %s700_s11 = smov [#allocation9]  }
   0x6   :  { %s37_s10 = sshll.u32 %s699_s30, 4  ;;  %s59_s12 = sshll.u32 %s700_s11, 4  ;;  %s38_s10 = int_to_ptr.vmem [resolvable:$true] %s37_s10  ;;  %s60_s12 = int_to_ptr.vmem [resolvable:$true] %s59_s12 }
   0x7   :  { %s489_s15 = scalar_lea.hbm %s881_s1, 128 }
   0x8   :  { %p490_p0 = scmp.ne.s32.totalorder %s881_s1, %s489_s15  ;;  %p493_p1 = scmp.lt.u32.totalorder %s489_s15, %s881_s1 }
   0xa   :  { %p495_p2 = pnand %p493_p1, %p490_p0 }
   0xc   :  { %498 = shalt.err (!%p495_p2)
}
   0xd   :  { %s499_s20 = scalar_lea.vmem %s38_s10, 128  ;;  %p504_p4 = scmp.lt.s32.totalorder %s38_s10, %s38_s10 }
   0xe   :  { %p500_p3 = scmp.ne.s32.totalorder %s38_s10, %s499_s20  ;;  %p505_p5 = scmp.lt.s32.totalorder %s499_s20, %s499_s20 }
  0x10   :  { %p506_p6 = por %p505_p5, %p504_p4 }
  0x12   :  { %p507_p7 = pnand %p506_p6, %p500_p3 }
  0x14   :  { %510 = shalt.err (!%p507_p7)
}
  0x15   :  { %40 = dma.hbm_to_vmem [thread:$0]  %s881_s1, 128, %s38_s10, [#allocation7]  }
  0x16   :  { %s511_s25 = scalar_lea.hbm %s883_s3, 64 }
  0x17   :  { %p512_p8 = scmp.ne.s32.totalorder %s883_s3, %s511_s25  ;;  %p515_p9 = scmp.lt.u32.totalorder %s511_s25, %s883_s3 }
  0x19   :  { %p517_p10 = pnand %p515_p9, %p512_p8 }
  0x1b   :  { %520 = shalt.err (!%p517_p10)
}
  0x1c   :  { %s521_s30 = scalar_lea.vmem %s60_s12, 64  ;;  %p526_p12 = scmp.lt.s32.totalorder %s60_s12, %s60_s12 }
  0x1d   :  { %p522_p11 = scmp.ne.s32.totalorder %s60_s12, %s521_s30  ;;  %p527_p13 = scmp.lt.s32.totalorder %s521_s30, %s521_s30 }
  0x1f   :  { %p528_p0 = por %p527_p13, %p526_p12 }
  0x21   :  { %p529_p1 = pnand %p528_p0, %p522_p11 }
  0x23   :  { %532 = shalt.err (!%p529_p1)
}
  0x24   :  { %62 = dma.hbm_to_vmem [thread:$0]  %s883_s3, 64, %s60_s12, [#allocation10]  }
  0x25   :  { %s701_s11 = smov [#allocation12]   ;;  %s702_s14 = smov [#allocation3]  }
  0x26   :  { %s78_s13 = sshll.u32 %s701_s11, 4  ;;  %s27_s15 = sshll.u32 %s702_s14, 4  ;;  %s79_s13 = int_to_ptr.vmem [resolvable:$true] %s78_s13  ;;  %s28_s15 = int_to_ptr.vmem [resolvable:$true] %s27_s15 }
  0x27   :  { %s533_s18 = scalar_lea.hbm %s885_s5, 512 }
  0x28   :  { %p534_p2 = scmp.ne.s32.totalorder %s885_s5, %s533_s18  ;;  %p537_p3 = scmp.lt.u32.totalorder %s533_s18, %s885_s5 }
  0x2a   :  { %p539_p4 = pnand %p537_p3, %p534_p2 }
  0x2c   :  { %542 = shalt.err (!%p539_p4)
}
  0x2d   :  { %s543_s3 = scalar_lea.vmem %s79_s13, 512  ;;  %p548_p6 = scmp.lt.s32.totalorder %s79_s13, %s79_s13 }
  0x2e   :  { %p544_p5 = scmp.ne.s32.totalorder %s79_s13, %s543_s3  ;;  %p549_p7 = scmp.lt.s32.totalorder %s543_s3, %s543_s3 }
  0x30   :  { %p550_p8 = por %p549_p7, %p548_p6 }
  0x32   :  { %p551_p9 = pnand %p550_p8, %p544_p5 }
  0x34   :  { %554 = shalt.err (!%p551_p9)
}
  0x35   :  { %s703_s12 = smov 128   ;;  %s704_s23 = smov 8  }
  0x36   :  { %84 = dma.hbm_to_vmem [thread:$0]  %s885_s5, 512, %s79_s13, [#allocation13], %s703_s12, %s703_s12, %s704_s23  }
  0x37   :  { %s555_s28 = scalar_lea.hbm %s880_s0, 128 }
  0x38   :  { %p556_p10 = scmp.ne.s32.totalorder %s880_s0, %s555_s28  ;;  %p559_p11 = scmp.lt.u32.totalorder %s555_s28, %s880_s0 }
  0x3a   :  { %p561_p12 = pnand %p559_p11, %p556_p10 }
  0x3c   :  { %564 = shalt.err (!%p561_p12)
}
  0x3d   :  { %s565_s11 = scalar_lea.vmem %s28_s15, 128  ;;  %p570_p0 = scmp.lt.s32.totalorder %s28_s15, %s28_s15 }
  0x3e   :  { %p566_p13 = scmp.ne.s32.totalorder %s28_s15, %s565_s11  ;;  %p571_p1 = scmp.lt.s32.totalorder %s565_s11, %s565_s11 }
  0x40   :  { %p572_p2 = por %p571_p1, %p570_p0 }
  0x42   :  { %p573_p3 = pnand %p572_p2, %p566_p13 }
  0x44   :  { %576 = shalt.err (!%p573_p3)
}
  0x45   :  { %30 = dma.hbm_to_vmem [thread:$0]  %s880_s0, 128, %s28_s15, [#allocation4]  }
  0x46   :  { %s705_s14 = smov [#allocation8]   ;;  %s706_s17 = smov [#allocation11]  }
  0x47   :  { %s46_s16 = sshll.u32 %s705_s14, 4  ;;  %s69_s18 = sshll.u32 %s706_s17, 4  ;;  %s47_s16 = int_to_ptr.vmem [resolvable:$true] %s46_s16  ;;  %s70_s18 = int_to_ptr.vmem [resolvable:$true] %s69_s18 }
  0x48   :  { %s577_s21 = scalar_lea.hbm %s882_s2, 256 }
  0x49   :  { %p578_p4 = scmp.ne.s32.totalorder %s882_s2, %s577_s21  ;;  %p581_p5 = scmp.lt.u32.totalorder %s577_s21, %s882_s2 }
  0x4b   :  { %p583_p6 = pnand %p581_p5, %p578_p4 }
  0x4d   :  { %586 = shalt.err (!%p583_p6)
}
  0x4e   :  { %s587_s0 = scalar_lea.vmem %s47_s16, 256  ;;  %p592_p8 = scmp.lt.s32.totalorder %s47_s16, %s47_s16 }
  0x4f   :  { %p588_p7 = scmp.ne.s32.totalorder %s47_s16, %s587_s0  ;;  %p593_p9 = scmp.lt.s32.totalorder %s587_s0, %s587_s0 }
  0x51   :  { %p594_p10 = por %p593_p9, %p592_p8 }
  0x53   :  { %p595_p11 = pnand %p594_p10, %p588_p7 }
  0x55   :  { %598 = shalt.err (!%p595_p11)
}
  0x56   :  { %52 = dma.hbm_to_vmem [thread:$0]  %s882_s2, 256, %s47_s16, [#allocation7], %s703_s12, %s703_s12, %s704_s23  }
  0x57   :  { %s599_s29 = scalar_lea.hbm %s884_s4, 16 }
  0x58   :  { %p600_p12 = scmp.ne.s32.totalorder %s884_s4, %s599_s29  ;;  %p603_p13 = scmp.lt.u32.totalorder %s599_s29, %s884_s4 }
  0x5a   :  { %p605_p0 = pnand %p603_p13, %p600_p12 }
  0x5c   :  { %608 = shalt.err (!%p605_p0)
}
  0x5d   :  { %s609_s5 = scalar_lea.vmem %s70_s18, 16  ;;  %s613_s13 = scalar_lea.vmem %s70_s18, 32 }
  0x5e   :  { %p610_p1 = scmp.ne.s32.totalorder %s70_s18, %s609_s5  ;;  %p614_p2 = scmp.lt.s32.totalorder %s70_s18, %s70_s18 }
  0x5f   :  { %p615_p3 = scmp.lt.s32.totalorder %s613_s13, %s609_s5 }
  0x61   :  { %p616_p4 = por %p615_p3, %p614_p2 }
  0x63   :  { %p617_p5 = pnand %p616_p4, %p610_p1 }
  0x65   :  { %620 = shalt.err (!%p617_p5)
}
  0x66   :  { %72 = dma.hbm_to_vmem [thread:$0]  %s884_s4, 16, %s70_s18, [#allocation10]  }
  0x67   :  { %s707_s23 = smov [#allocation14]   ;;  %s708_s16 = smov [#allocation15]  }
  0x68   :  { %s91_s14 = sshll.u32 %s707_s23, 4  ;;  %s101_s17 = sshll.u32 %s708_s16, 4  ;;  %s92_s14 = int_to_ptr.vmem [resolvable:$true] %s91_s14  ;;  %s102_s17 = int_to_ptr.vmem [resolvable:$true] %s101_s17 }
  0x69   :  { %s621_s21 = scalar_lea.hbm %s886_s6, 16 }
  0x6a   :  { %p622_p6 = scmp.ne.s32.totalorder %s886_s6, %s621_s21  ;;  %p625_p7 = scmp.lt.u32.totalorder %s621_s21, %s886_s6 }
  0x6c   :  { %p627_p8 = pnand %p625_p7, %p622_p6 }
  0x6e   :  { %630 = shalt.err (!%p627_p8)
}
  0x6f   :  { %s631_s4 = scalar_lea.vmem %s92_s14, 16  ;;  %s635_s18 = scalar_lea.vmem %s92_s14, 32 }
  0x70   :  { %p632_p9 = scmp.ne.s32.totalorder %s92_s14, %s631_s4  ;;  %p636_p10 = scmp.lt.s32.totalorder %s92_s14, %s92_s14 }
  0x71   :  { %p637_p11 = scmp.lt.s32.totalorder %s635_s18, %s631_s4 }
  0x73   :  { %p638_p12 = por %p637_p11, %p636_p10 }
  0x75   :  { %p639_p13 = pnand %p638_p12, %p632_p9 }
  0x77   :  { %642 = shalt.err (!%p639_p13)
}
  0x78   :  { %94 = dma.hbm_to_vmem [thread:$0]  %s886_s6, 16, %s92_s14, [#allocation13]  }
  0x79   :  { %s643_s28 = scalar_lea.hbm %s887_s7, 16 }
  0x7a   :  { %p644_p0 = scmp.ne.s32.totalorder %s887_s7, %s643_s28  ;;  %p647_p1 = scmp.lt.u32.totalorder %s643_s28, %s887_s7 }
  0x7c   :  { %p649_p2 = pnand %p647_p1, %p644_p0 }
  0x7e   :  { %652 = shalt.err (!%p649_p2)
}
  0x7f   :  { %s653_s11 = scalar_lea.vmem %s102_s17, 16  ;;  %s657_s5 = scalar_lea.vmem %s102_s17, 32 }
  0x80   :  { %p654_p3 = scmp.ne.s32.totalorder %s102_s17, %s653_s11  ;;  %p658_p4 = scmp.lt.s32.totalorder %s102_s17, %s102_s17 }
  0x81   :  { %p659_p5 = scmp.lt.s32.totalorder %s657_s5, %s653_s11 }
  0x83   :  { %p660_p6 = por %p659_p5, %p658_p4 }
  0x85   :  { %p661_p7 = pnand %p660_p6, %p654_p3 }
  0x87   :  { %664 = shalt.err (!%p661_p7)
}
  0x88   :  { %104 = dma.hbm_to_vmem [thread:$0]  %s887_s7, 16, %s102_s17, [#allocation16]  }
  0x89   :  { %687 = dma.done.wait [#allocation4], 128  }
  0x8a   :  { %688 = vsyncadd [#allocation4], 4294967168 }
  0x8b   :  { %689 = dma.done.wait [#allocation7], 384  }
  0x8c   :  { %690 = vsyncadd [#allocation7], 4294966912 }
  0x8d   :  { %691 = dma.done.wait [#allocation10], 80  }
  0x8e   :  { %692 = vsyncadd [#allocation10], 4294967216 }
  0x8f   :  { %693 = dma.done.wait [#allocation13], 528  }
  0x90   :  { %694 = vsyncadd [#allocation13], 4294966768 }
  0x91   :  { %695 = dma.done.wait [#allocation16], 16  }
  0x92   :  { %696 = vsyncadd [#allocation16], 4294967280  ;;  %v709_v0 = vmov 0.0   ;;  %vm710_vm0 = vmmov 0   ;;  %v711_v1 = vmov 0.0|0.0   ;;  %vm140_vm1 = vcmask 1043456  }
  0x93   :  { %443 = vmatprep.subr.mxu1 %v709_v0  ;;  %445 = vmatprep.mubr.msk.f32.mxu1 %vm710_vm0, %v709_v0  ;;  %vm136_vm2 = vcmask 31744   ;;  %v135_v2 = vld [vmem:[#allocation9] sm:$0xf]  ;;  %v132_v3 = vld [vmem:[#allocation6] sm:$0xff]  ;;  %v133_v4 = vld [vmem:[#allocation8] sm:$0xff]  ;;  %vm214_vm3 = vcmask 130048   ;;  %v398_v30 = vlaneseq  ;;  %v395_v33 = vstv %s888_s8 }
  0x94   :  { %469 = vmatprep.subr.bf16.mxu0 %v711_v1  ;;  %463 = vmatprep.mubr.msk.f32.mxu0 %vm710_vm0, %v709_v0  ;;  %v134_v5 = vld [vmem:[#allocation8 + $0x8] sm:$0xff]  ;;  %v131_v7 = vld [vmem:[#allocation3] sm:$0xff]  ;;  %v298_v9 = vld [vmem:[#allocation12 + $0x8] sm:$0xff]  ;;  %vm308_vm4 = vcmask 261120   ;;  %s712_s12 = smov [#allocation17]   ;;  %vm405_vm5 = vcmask 57344  }
  0x95   :  { %444 = vmatpush3.msk.msra.mxu1 %vm140_vm1, %v135_v2  ;;  %v467_v6 = vpack.c.bf16 %v134_v5, %v133_v4  ;;  %v297_v8 = vld [vmem:[#allocation12] sm:$0xff]  ;;  %v299_v11 = vld [vmem:[#allocation12 + $0x10] sm:$0xff]  ;;  %v300_v12 = vld [vmem:[#allocation12 + $0x18] sm:$0xff]  ;;  %v399_v31 = vand.u32 127, %v398_v30  ;;  %v401_v32 = vshrl.u32 %v398_v30, 7  ;;  %s413_s23 = sshll.u32 %s712_s12, 4  ;;  %s414_s23 = int_to_ptr.vmem [resolvable:$true] %s413_s23 }
  0x96   :  { %446 = vmatmul.mubr.msk.f32.vlgmr.msra.gmra.mrb[0].mxu1 %vm136_vm2, %v132_v3  ;;  %466 = vmatprep.subr.bf16.mxu1 %v711_v1  ;;  %v470_v10 = vpack.c.bf16 %v298_v9, %v297_v8  ;;  %v473_v13 = vpack.c.bf16 %v300_v12, %v299_v11  ;;  %v429_v17 = vld [vmem:[#allocation11] ss:$0 sm:$0xff]  ;;  %v430_v22 = vld [vmem:[#allocation14] ss:$0 sm:$0xff]  ;;  %v432_v26 = vld [vmem:[#allocation15] ss:$0 sm:$0xff]  ;;  %p670_p9 = scmp.lt.s32.totalorder %s414_s23, %s414_s23 }
  0x97   :  { %452 = vmatprep.mubr.msk.f32.mxu1 %vm710_vm0, %v709_v0  ;;  %468 = vmatpush3.bf16.msra.mxu1 %v467_v6  ;;  %v402_v34 = vsub.s32 %v399_v31, %v401_v32  ;;  %s665_s14 = scalar_lea.vmem %s414_s23, 16  ;;  %s669_s16 = scalar_lea.vmem %s414_s23, 32 }
  0x98   :  { %471 = vmatpush3.bf16.msra.mxu0 %v470_v10  ;;  %p666_p8 = scmp.ne.s32.totalorder %s414_s23, %s665_s14  ;;  %p671_p10 = scmp.lt.s32.totalorder %s669_s16, %s665_s14 }
  0x99   :  { %472 = vmatprep.subr.bf16.mxu0 %v711_v1 }
  0x9a   :  { %453 = vmatmul.mubr.msk.f32.vlgmr.msra.gmra.mrb[2].mxu1 %vm214_vm3, %v131_v7  ;;  %p672_p11 = por %p671_p10, %p670_p9 }
  0x9c   :  { %474 = vmatpush3.bf16.msra.mxu0 %v473_v13  ;;  %p673_p12 = pnand %p672_p11, %p666_p8 }
 0x169   :  { %v210_v14 = vpop.f32.mrb[0].mxu1 }
 0x16a   :  { %v447_v15 = vpop.f32.mrb[1].mxu1 }
 0x16d   :  { %v284_v16 = vpop.f32.mrb[2].mxu1 }
 0x16e   :  { %v285_v18 = vadd.f32 %v284_v16, %v210_v14  ;;  %v454_v19 = vpop.f32.mrb[3].mxu1 }
 0x170   :  { %v295_v20 = vadd.f32 %v429_v17, %v285_v18 }
 0x172   :  { %v296_v21 = vmax.f32 %v295_v20, 0.0 }
 0x174   :  { %464 = vmatmul.mubr.msk.f32.vlgmr.msra.gmra.mrb[0].mxu0 %vm308_vm4, %v296_v21 }
 0x247   :  { %v378_v23 = vpop.f32.mrb[0].mxu0 }
 0x248   :  { %v379_v24 = vadd.f32 %v430_v22, %v378_v23  ;;  %v465_v25 = vpop.f32.mrb[1].mxu0 }
 0x24a   :  { %v382_v27 = vmax.f32 %v379_v24, 0.0 }
 0x24c   :  { %v390_v28 = vmul.f32 %v432_v26, %v382_v27 }
 0x24e   :  { %v391_v29 = vsel %vm308_vm4, %v390_v28, 0.0 }
 0x24f   :  { %392 = vadd.xlane.f32.xlu0 %v391_v29 }
 0x2dc   :  { %v393_v35 = vpop.xlane.xlu0 %392 }
 0x2dd   :  { %v396_v36 = vadd.f32 %v395_v33, %v393_v35 }
 0x2df   :  { %v403_v37 = vrot.slane %v396_v36, %v402_v34 }
 0x2e1   :  { %406 = vst.msk [vmem:[#allocation17] sm:$0x1] %vm405_vm5, %v403_v37 }
 0x2e2   :  { %676 = shalt.err (!%p673_p12)
}
 0x2e3   :  { %s677_s8 = scalar_lea.hbm %s889_s9, 16 }
 0x2e4   :  { %p678_p13 = scmp.ne.s32.totalorder %s889_s9, %s677_s8  ;;  %p681_p0 = scmp.lt.u32.totalorder %s677_s8, %s889_s9 }
 0x2e6   :  { %p683_p1 = pnand %p681_p0, %p678_p13 }
 0x2e8   :  { %686 = shalt.err (!%p683_p1)
}
 0x2e9   :  { %416 = dma.vmem_to_hbm [thread:$0]  %s414_s23, 16, %s889_s9, [#allocation5]  }
 0x2ea   :  { %697 = dma.done.wait [#allocation5], 16  }
 0x2eb   :  { %698 = vsyncadd [#allocation5], 4294967280 }
 0x2ec   :  { %420 = vsyncpa [#allocation4], 1 }
 0x2ed   :  { %421 = vsyncpa [#allocation7], 1 }
 0x2ee   :  { %422 = vsyncpa [#allocation10], 1 }
 0x2ef   :  { %423 = vsyncpa [#allocation13], 1 }
 0x2f0   :  { %424 = vsyncpa [#allocation16], 1 }
 0x2f1   :  { %425 = vsyncpa [#allocation5], 1 }

</bundles_post_ra>
